<compile_context>
chip_gen: v5e
topology: v5e:2x2
jax: 0.10.0
libtpu: 0.0.40
codegen_flags: <defaults>
</compile_context>

<pallas_src>
import functools

import jax
import jax.numpy as jnp
from jax.experimental import pallas as pl
from jax.experimental.pallas import tpu as pltpu


_LANE = 128
_MAX_TILE_L = 8192                     # lane-dense, well past the roofline knee
_VMEM_BLOCK_BUDGET = 24 * 1024 * 1024  # double-buffered in+out blocks (v7x safe)


def _round_up(x, m):
    return (x + m - 1) // m * m


def _choose_tiles(n_classes, N, L):
    """Pick (tile_n, tile_l): lane-dense, double-buffer blocks within budget."""
    # Per-block bytes (tile_n = 1): (C * TILE_L + TILE_L) * 4; double-buffered x2.
    max_l_by_vmem = _VMEM_BLOCK_BUDGET // (8 * (n_classes + 1))
    tile_l = min(_MAX_TILE_L, max_l_by_vmem, _round_up(L, _LANE))
    tile_l = max(_LANE, (tile_l // _LANE) * _LANE)

    # If the whole (padded) spatial axis fits in one lane tile, fold batch rows
    # into the block to amortize per-grid-step overhead.  tile_n must divide N
    # exactly (no batch padding -> no wasted HBM writes).
    tile_n = 1
    if _round_up(L, _LANE) <= tile_l:
        block_bytes_1 = 8 * (n_classes + 1) * tile_l  # double-buffered, tile_n=1
        max_n_by_vmem = max(1, _VMEM_BLOCK_BUDGET // block_bytes_1)
        for cand in range(min(N, max_n_by_vmem), 0, -1):
            if N % cand == 0:
                tile_n = cand
                break
    return tile_n, tile_l


def _onehot_kernel(label_ref, out_ref, *, n_classes, lb_pos, lb_neg, ignore_idx):
    # label_ref: (TILE_N, TILE_L) int32
    # out_ref:   (TILE_N, n_classes, TILE_L) float32
    lab = label_ref[...]                                   # (TILE_N, TILE_L)
    tn, tl = lab.shape

    # Per-lane positive / negative values.  Ignore handling is folded in here
    # so there is only ONE full-(TILE_N, C, TILE_L) select below.
    if ignore_idx >= 0:
        keep = lab != jnp.int32(ignore_idx)                # (TILE_N, TILE_L)
        pos = jnp.where(keep, jnp.float32(lb_pos), jnp.float32(0.0))
        neg = jnp.where(keep, jnp.float32(lb_neg), jnp.float32(0.0))
    else:
        pos = jnp.full((tn, tl), jnp.float32(lb_pos))
        neg = jnp.full((tn, tl), jnp.float32(lb_neg))

    cls = jax.lax.broadcasted_iota(jnp.int32, (1, n_classes, tl), 1)
    eq = cls == lab[:, None, :]                            # (TILE_N, C, TILE_L)
    out_ref[...] = jnp.where(eq, pos[:, None, :], neg[:, None, :])


def onehot_encode(label, n_classes, lb_smooth=0.0, ignore_idx=-1):
    """Pallas equivalent of OnehotEncoder.forward.

    label: int array of shape (N, *spatial) (e.g. (N, H, W))
    returns: float32 array of shape (N, n_classes, *spatial)
    """
    label = label.astype(jnp.int32)
    lb_pos = 1.0 - lb_smooth
    lb_neg = lb_smooth / n_classes

    in_shape = label.shape
    N = in_shape[0]
    spatial = in_shape[1:]
    L = 1
    for s in spatial:
        L *= s
    label2d = label.reshape(N, L)

    # Lane-dense tiling of the spatial axis; fold batch rows when L is small.
    tile_n, tile_l = _choose_tiles(n_classes, N, L)
    L_pad = _round_up(L, tile_l)
    if L_pad != L:
        label2d = jnp.pad(label2d, ((0, 0), (0, L_pad - L)))
    num_l_tiles = L_pad // tile_l
    num_n_tiles = N // tile_n

    kernel = functools.partial(
        _onehot_kernel,
        n_classes=n_classes,
        lb_pos=lb_pos,
        lb_neg=lb_neg,
        ignore_idx=ignore_idx,
    )

    # Explicit VMEM limit: our double-buffered blocks are modest; keep the
    # limit safe on v7x (64 MiB physical) as well as v5e/v6e.
    block_bytes = 2 * tile_n * (n_classes * tile_l * 4 + tile_l * 4)
    vmem_limit = min(max(4 * block_bytes, 16 * 1024 * 1024), 32 * 1024 * 1024)

    out = pl.pallas_call(
        kernel,
        out_shape=jax.ShapeDtypeStruct((N, n_classes, L_pad), jnp.float32),
        grid_spec=pltpu.PrefetchScalarGridSpec(
            num_scalar_prefetch=0,
            grid=(num_n_tiles, num_l_tiles),
            in_specs=[pl.BlockSpec((tile_n, tile_l), lambda i, j: (i, j))],
            out_specs=pl.BlockSpec((tile_n, n_classes, tile_l),
                                   lambda i, j: (i, 0, j)),
        ),
        compiler_params=pltpu.CompilerParams(
            dimension_semantics=("parallel", "parallel"),
            vmem_limit_bytes=vmem_limit),
    )(label2d)

    if L_pad != L:
        out = out[:, :, :L]
    return out.reshape((N, n_classes) + spatial)


def _reference(label, n_classes, lb_smooth=0.0, ignore_idx=-1):
    """Pure-JAX reference matching the PyTorch semantics (in-range labels)."""
    lb_pos = 1.0 - lb_smooth
    lb_neg = lb_smooth / n_classes
    lab = label.astype(jnp.int32)
    cls_shape = (1, n_classes) + (1,) * (lab.ndim - 1)
    cls = jnp.arange(n_classes, dtype=jnp.int32).reshape(cls_shape)
    eq = lab[:, None] == cls
    oh = jnp.where(eq, jnp.float32(lb_pos), jnp.float32(lb_neg))
    if ignore_idx >= 0:
        ignore = (lab == ignore_idx)[:, None]
        oh = jnp.where(ignore, jnp.float32(0.0), oh)
    return oh.astype(jnp.float32)


if __name__ == "__main__":
    key = jax.random.PRNGKey(0)
    N, C, H, W = 2, 10, 16, 16
    lb_smooth = 0.1
    ignore_idx = 255

    # labels in [0, C), with a few positions set to the ignore index
    k1, k2 = jax.random.split(key)
    label = jax.random.randint(k1, (N, H, W), 0, C, dtype=jnp.int32)
    ignore_mask = jax.random.uniform(k2, (N, H, W)) < 0.1
    label = jnp.where(ignore_mask, ignore_idx, label)

    # case 1: no ignore handling (ignore_idx=-1), labels valid
    label_valid = jax.random.randint(k1, (N, H, W), 0, C, dtype=jnp.int32)
    out1 = onehot_encode(label_valid, C, lb_smooth=lb_smooth, ignore_idx=-1)
    out1 = jax.block_until_ready(out1)
    ref1 = _reference(label_valid, C, lb_smooth=lb_smooth, ignore_idx=-1)
    assert out1.shape == (N, C, H, W) and out1.dtype == jnp.float32
    assert jnp.allclose(out1, ref1, atol=1e-6)

    # case 2: with ignore index handling
    out2 = onehot_encode(label, C, lb_smooth=lb_smooth, ignore_idx=ignore_idx)
    out2 = jax.block_until_ready(out2)
    ref2 = _reference(label, C, lb_smooth=lb_smooth, ignore_idx=ignore_idx)
    assert out2.shape == (N, C, H, W) and out2.dtype == jnp.float32
    assert jnp.allclose(out2, ref2, atol=1e-6)

    # case 3: spatial size not a multiple of the lane tile (exercises padding)
    H3, W3 = 17, 13
    label3 = jax.random.randint(k2, (N, H3, W3), 0, C, dtype=jnp.int32)
    out3 = onehot_encode(label3, C, lb_smooth=lb_smooth, ignore_idx=-1)
    out3 = jax.block_until_ready(out3)
    ref3 = _reference(label3, C, lb_smooth=lb_smooth, ignore_idx=-1)
    assert out3.shape == (N, C, H3, W3)
    assert jnp.allclose(out3, ref3, atol=1e-6)

    # case 4: larger spatial extent spanning several lane tiles + odd batch
    N4, H4, W4 = 3, 64, 48
    label4 = jax.random.randint(k2, (N4, H4, W4), 0, C, dtype=jnp.int32)
    label4 = jnp.where(jax.random.uniform(k1, (N4, H4, W4)) < 0.05,
                       ignore_idx, label4)
    out4 = onehot_encode(label4, C, lb_smooth=lb_smooth, ignore_idx=ignore_idx)
    out4 = jax.block_until_ready(out4)
    ref4 = _reference(label4, C, lb_smooth=lb_smooth, ignore_idx=ignore_idx)
    assert out4.shape == (N4, C, H4, W4)
    assert jnp.allclose(out4, ref4, atol=1e-6)

    print("KERNEL_OK")
</pallas_src>

<mosaic_0001>
module attributes {stable_mosaic.version = 11 : i64} {
  func.func @_onehot_kernel(%arg0: i32, %arg1: i32, %arg2: memref<2x256xi32, #tpu.memory_space<vmem>>, %arg3: memref<2x10x256xf32, #tpu.memory_space<vmem>>) attributes {dimension_semantics = [#tpu.dimension_semantics<parallel>, #tpu.dimension_semantics<parallel>], iteration_bounds = array<i64: 1, 1>, scalar_prefetch = 0 : i64, scratch_operands = 0 : i64, tpu.core_type = #tpu.core_type<tc>, window_params = [{transform_indices = @transform_0, window_bounds = array<i64: 2, 256>}, {transform_indices = @transform_1, window_bounds = array<i64: 2, 10, 256>}]} {
    %c0 = arith.constant 0 : index
    %c0_0 = arith.constant 0 : index
    %0 = vector.load %arg2[%c0, %c0_0] : memref<2x256xi32, #tpu.memory_space<vmem>>, vector<2x256xi32>
    %cst = arith.constant 0.899999976 : f32
    %1 = vector.broadcast %cst : f32 to vector<2x256xf32>
    %cst_1 = arith.constant 0.00999999977 : f32
    %2 = vector.broadcast %cst_1 : f32 to vector<2x256xf32>
    %3 = tpu.iota {dimensions = array<i32: 1>} : vector<1x10x256xi32>
    %4 = vector.shape_cast %0 : vector<2x256xi32> to vector<2x1x256xi32>
    %5 = vector.broadcast %3 : vector<1x10x256xi32> to vector<2x10x256xi32>
    %6 = vector.broadcast %4 : vector<2x1x256xi32> to vector<2x10x256xi32>
    %7 = arith.cmpi eq, %5, %6 : vector<2x10x256xi32>
    %8 = vector.shape_cast %1 : vector<2x256xf32> to vector<2x1x256xf32>
    %9 = vector.shape_cast %2 : vector<2x256xf32> to vector<2x1x256xf32>
    %10 = vector.shape_cast %8 : vector<2x1x256xf32> to vector<2x1x256xf32>
    %11 = vector.broadcast %10 : vector<2x1x256xf32> to vector<2x10x256xf32>
    %12 = vector.shape_cast %9 : vector<2x1x256xf32> to vector<2x1x256xf32>
    %13 = vector.broadcast %12 : vector<2x1x256xf32> to vector<2x10x256xf32>
    %14 = arith.select %7, %11, %13 : vector<2x10x256xi1>, vector<2x10x256xf32>
    %c0_2 = arith.constant 0 : index
    %c0_3 = arith.constant 0 : index
    %c0_4 = arith.constant 0 : index
    %15 = vector.load %arg3[%c0_2, %c0_3, %c0_4] : memref<2x10x256xf32, #tpu.memory_space<vmem>>, vector<2x10x256xf32>
    tpu.vector_store %arg3[%c0_2, %c0_3, %c0_4], %14 {strides = array<i32>} : memref<2x10x256xf32, #tpu.memory_space<vmem>>, vector<2x10x256xf32>,
    return
  }
  func.func @transform_0(%arg0: i32, %arg1: i32) -> (i32, i32) {
    %c0_i32 = arith.constant 0 : i32
    return %arg0, %arg1 : i32, i32
  }
  func.func @transform_1(%arg0: i32, %arg1: i32) -> (i32, i32, i32) {
    %c0_i32 = arith.constant 0 : i32
    %c0_i32_0 = arith.constant 0 : i32
    return %arg0, %c0_i32, %arg1 : i32, i32, i32
  }
}

</mosaic_0001>

<bundles_post_ra>
// kernel: tpu_custom_call.1
= control target key start
LH: loop header
LB: loop body
LE: loop exit
PB: predicated region body
PF: predicated region fallthrough
CT: control target
= control target key end

     0   :  { %6 = vsyncpa [#allocation3], 0  ;;  %s103_s9 = smov [#allocation2]   ;;  %s142_s0 = inlined_call_operand.hbm [shape: s32[2,256], index: 0, kind: input, shape index: {}]   ;;  %s143_s1 = inlined_call_operand.vmem [shape: f32[2,10,256], index: 1, kind: output, shape index: {}]  }
   0x1   :  { %s12_s8 = sshll.u32 %s142_s0, 4  ;;  %s14_s10 = sshll.u32 %s103_s9, 4  ;;  %s13_s8 = int_to_ptr.hbm [resolvable:$true] %s12_s8  ;;  %s15_s10 = int_to_ptr.vmem [resolvable:$true] %s14_s10 }
   0x2   :  { %17 = dma.hbm_to_vmem [thread:$0]  %s13_s8, 64, %s15_s10, [#allocation3]  }
   0x3   :  { %101 = dma.done.wait [#allocation3], 64  }
   0x4   :  { %102 = vsyncadd [#allocation3], 4294967232  ;;  %v23_v0 = vlaneseq  ;;  %vm29_vm0 = vcmask 1040384   ;;  %v22_v2 = vld [vmem:[#allocation2] sm:$0xf]  ;;  %vm31_vm1 = vcmask 1042434  }
   0x5   :  { %vm33_vm2 = vcmask 1041408   ;;  %vm35_vm3 = vcmask 1041409   ;;  %vm37_vm4 = vcmask 1043459   ;;  %v26_v3 = vrot.slane %v22_v2, 1 }
   0x6   :  { %v24_v1 = vshrl.u32 %v23_v0, 7  ;;  %v27_v4 = vrot.slane %v22_v2, 2  ;;  %v28_v5 = vrot.slane %v22_v2, 3  ;;  %vm39_vm5 = vcmask 1042433  }
   0x7   :  { %v30_v7 = vsel %vm29_vm0, %v22_v2, %v26_v3  ;;  %v36_v9 = vsel %vm35_vm3, %v22_v2, %v26_v3  ;;  %v104_v16 = vmov 0.01  }
   0x8   :  { %v25_v6 = vadd.s32 8, %v24_v1  ;;  %v32_v8 = vsel %vm31_vm1, %v27_v4, %v28_v5  ;;  %v38_v10 = vsel %vm37_vm4, %v27_v4, %v28_v5 }
   0x9   :  { %v34_v11 = vsel %vm33_vm2, %v30_v7, %v32_v8  ;;  %v40_v12 = vsel %vm39_vm5, %v36_v9, %v38_v10 }
   0xa   :  { %v42_v13 = vperm.slane %v34_v11, 0  ;;  %v43_v14 = vperm.slane %v34_v11, 1  ;;  %v41_v15 = vrot.slane %v40_v12, 1 }
   0xc   :  { %vm46_vm6 = vcmp.eq.s32.totalorder %v24_v1, %v42_v13  ;;  %vm47_vm7 = vcmp.eq.s32.totalorder %v24_v1, %v43_v14  ;;  %vm48_vm8 = vcmp.eq.s32.totalorder %v25_v6, %v42_v13  ;;  %vm49_vm9 = vcmp.eq.s32.totalorder %v25_v6, %v43_v14 }
   0xd   :  { %v54_v17 = vsel %vm46_vm6, 0.9, %v104_v16  ;;  %v55_v18 = vsel %vm47_vm7, 0.9, %v104_v16  ;;  %v56_v19 = vsel %vm48_vm8, 0.9, %v104_v16 }
   0xe   :  { %62 = vst [vmem:[%s143_s1] sm:$0xff] %v54_v17  ;;  %v57_v20 = vsel %vm49_vm9, 0.9, %v104_v16  ;;  %v44_v21 = vperm.slane %v41_v15, 0  ;;  %v45_v22 = vperm.slane %v41_v15, 1 }
   0xf   :  { %63 = vst [vmem:[%s143_s1 + $0x8] sm:$0xff] %v55_v18 }
  0x10   :  { %64 = vst [vmem:[%s143_s1 + $0x10] sm:$0x3] %v56_v19  ;;  %vm50_vm10 = vcmp.eq.s32.totalorder %v24_v1, %v44_v21  ;;  %vm51_vm11 = vcmp.eq.s32.totalorder %v24_v1, %v45_v22  ;;  %vm52_vm12 = vcmp.eq.s32.totalorder %v25_v6, %v44_v21  ;;  %vm53_vm13 = vcmp.eq.s32.totalorder %v25_v6, %v45_v22 }
  0x11   :  { %65 = vst [vmem:[%s143_s1 + $0x18] sm:$0x3] %v57_v20  ;;  %v58_v23 = vsel %vm50_vm10, 0.9, %v104_v16  ;;  %v59_v24 = vsel %vm51_vm11, 0.9, %v104_v16 }
  0x12   :  { %66 = vst [vmem:[%s143_s1 + $0x20] sm:$0xff] %v58_v23  ;;  %v60_v25 = vsel %vm52_vm12, 0.9, %v104_v16  ;;  %v61_v26 = vsel %vm53_vm13, 0.9, %v104_v16 }
  0x13   :  { %67 = vst [vmem:[%s143_s1 + $0x28] sm:$0xff] %v59_v24 }
  0x14   :  { %68 = vst [vmem:[%s143_s1 + $0x30] sm:$0x3] %v60_v25 }
  0x15   :  { %69 = vst [vmem:[%s143_s1 + $0x38] sm:$0x3] %v61_v26 }
  0x16   :  { %74 = vsyncpa [#allocation3], 1 }

</bundles_post_ra>
